<compile_context>
chip_gen: v7x
topology: tpu7x:2x2x1
jax: 0.10.0
libtpu: 0.0.40
codegen_flags: <defaults>
</compile_context>

<pallas_src>
import jax
import jax.numpy as jnp
from jax.experimental import pallas as pl
from jax.experimental.pallas import tpu as pltpu


def _cholesky_kernel(cov_ref, scale_tril_ref):
    """scale_tril = cholesky(cov) via an unmasked right-looking (rank-1)
    update, unrolled over the static action_dim. Float32 on the VPU/EUP."""
    A = cov_ref[...].astype(jnp.float32)          # (D, D), symmetric (mirrored)
    D = A.shape[0]

    # Iotas built once (JAX does not CSE broadcast_in_dim; keep them hoisted).
    row_ids = jax.lax.broadcasted_iota(jnp.int32, (D, D), 0)
    col_ids = jax.lax.broadcasted_iota(jnp.int32, (D, D), 1)
    tril = row_ids >= col_ids

    # Relative pivot floor (eps * trace / D), computed once, off the serial
    # chain, kept as a (1,1) vector value.
    diag_sum = jnp.sum(jnp.where(row_ids == col_ids, A, 0.0), keepdims=True)
    pivot_floor = (jnp.float32(1e-12) / D) * diag_sum            # (1, 1)

    L = jnp.zeros((D, D), jnp.float32)
    for j in range(D):                      # unrolled at trace time (D static)
        # (1,1) pivot slice: EUP rsqrt + VPU broadcast-multiply, no
        # vreg->scalar extraction on the serial dependency chain.
        inv_d = jax.lax.rsqrt(jnp.maximum(A[j:j + 1, j:j + 1], pivot_floor))
        cj_col = A[:, j:j + 1] * inv_d                           # (D, 1)
        L = jnp.where(col_ids == j, cj_col, L)                   # insert column j
        if j + 1 < D:                                            # skip dead last update
            cj_row = A[j:j + 1, :] * inv_d                       # (1, D)
            A = A - cj_col * cj_row                              # unmasked rank-1 update

    # Single lower-triangular mask replaces all per-column operand masks.
    scale_tril_ref[...] = jnp.where(tril, L, 0.0).astype(scale_tril_ref.dtype)


def cholesky_scale_tril(cov):
    """Cholesky factor of the covariance matrix (what torch's MVN computes
    eagerly). In a PPO training loop, call this once per parameter update and
    reuse the result — the covariance comes from module parameters, not
    per-sample activations."""
    D = cov.shape[0]
    assert cov.shape == (D, D)
    # torch.linalg.cholesky reads only the lower triangle: mirror it onto the
    # upper triangle so slightly asymmetric inputs match the reference exactly.
    tril = jnp.tril(jnp.ones((D, D), dtype=bool))
    cov = jnp.where(tril, cov, cov.T)
    return pl.pallas_call(
        _cholesky_kernel,
        out_shape=jax.ShapeDtypeStruct((D, D), cov.dtype),
        in_specs=[pl.BlockSpec(memory_space=pltpu.MemorySpace.VMEM)],
        out_specs=pl.BlockSpec(memory_space=pltpu.MemorySpace.VMEM),
    )(cov)


def normal_forward(mu, cov):
    """Equivalent of Normal.forward(mu, std): returns the defining tensors of
    MultivariateNormal(loc=mu, covariance_matrix=cov) -> (loc, scale_tril).

    `loc` is `mu` unchanged — returned directly (no kernel copy)."""
    B, D = mu.shape
    assert cov.shape == (D, D)
    return mu, cholesky_scale_tril(cov)


if __name__ == "__main__":
    action_dim = 4
    batch = 2

    # Module parameter from __init__ (deterministic; unused by forward, kept
    # for parity with the PyTorch module).
    stds_param = jnp.eye(action_dim, dtype=jnp.float32)

    key = jax.random.PRNGKey(0)
    k_mu, k_m = jax.random.split(key)
    mu = jax.random.normal(k_mu, (batch, action_dim), dtype=jnp.float32)
    # Build a deterministic symmetric positive-definite covariance matrix.
    m = jax.random.normal(k_m, (action_dim, action_dim), dtype=jnp.float32)
    cov = m @ m.T / action_dim + 0.5 * stds_param  # SPD

    loc, scale_tril = jax.block_until_ready(normal_forward(mu, cov))

    # Reference check against jnp.linalg.cholesky (what torch's MVN computes).
    ref_tril = jnp.linalg.cholesky(cov)
    assert jnp.allclose(scale_tril, ref_tril, atol=1e-5, rtol=1e-5), "cholesky mismatch"
    assert jnp.allclose(loc, mu), "loc mismatch"
    # Round-trip: L @ L.T should reconstruct the covariance.
    assert jnp.allclose(scale_tril @ scale_tril.T, cov, atol=1e-5, rtol=1e-5)

    print("KERNEL_OK")
</pallas_src>

<mosaic_0001>
module attributes {stable_mosaic.version = 11 : i64} {
  func.func @_cholesky_kernel(%arg0: memref<4x4xf32, #tpu.memory_space<vmem>>, %arg1: memref<4x4xf32, #tpu.memory_space<vmem>>) attributes {dimension_semantics = [], scalar_prefetch = 0 : i64, scratch_operands = 0 : i64, tpu.core_type = #tpu.core_type<tc>} {
    %c0 = arith.constant 0 : index
    %c0_0 = arith.constant 0 : index
    %0 = vector.load %arg0[%c0, %c0_0] : memref<4x4xf32, #tpu.memory_space<vmem>>, vector<4x4xf32>
    %1 = tpu.iota {dimensions = array<i32: 0>} : vector<4x4xi32>
    %2 = tpu.iota {dimensions = array<i32: 1>} : vector<4x4xi32>
    %3 = arith.cmpi sge, %1, %2 : vector<4x4xi32>
    %4 = arith.cmpi eq, %1, %2 : vector<4x4xi32>
    %cst = arith.constant 0.000000e+00 : f32
    %5 = vector.broadcast %cst : f32 to vector<4x4xf32>
    %6 = arith.select %4, %0, %5 : vector<4x4xi1>, vector<4x4xf32>
    %7 = vector.shape_cast %6 : vector<4x4xf32> to vector<1x4x4xf32>
    %cst_1 = arith.constant dense<0.000000e+00> : vector<1xf32>
    %8 = vector.multi_reduction <add>, %7, %cst_1 [1, 2] : vector<1x4x4xf32> to vector<1xf32>
    %9 = vector.shape_cast %8 : vector<1xf32> to vector<1x1x1xf32>
    %10 = vector.extract %9[0, 0, 0] : f32 from vector<1x1x1xf32>
    %11 = vector.broadcast %10 : f32 to vector<1x1xf32>
    %cst_2 = arith.constant 9.99999996E-13 : f32
    %cst_3 = arith.constant 4.000000e+00 : f32
    %12 = arith.divf %cst_2, %cst_3 : f32
    %13 = vector.broadcast %12 : f32 to vector<1x1xf32>
    %14 = arith.mulf %13, %11 : vector<1x1xf32>
    %cst_4 = arith.constant 0.000000e+00 : f32
    %15 = vector.broadcast %cst_4 : f32 to vector<4x4xf32>
    %16 = vector.extract_strided_slice %0 {offsets = [0, 0], sizes = [1, 1], strides = [1, 1]} : vector<4x4xf32> to vector<1x1xf32>
    %17 = arith.maximumf %16, %14 : vector<1x1xf32>
    %18 = math.rsqrt %17 : vector<1x1xf32>
    %19 = vector.extract_strided_slice %0 {offsets = [0, 0], sizes = [4, 1], strides = [1, 1]} : vector<4x4xf32> to vector<4x1xf32>
    %20 = vector.broadcast %18 : vector<1x1xf32> to vector<4x1xf32>
    %21 = arith.mulf %19, %20 : vector<4x1xf32>
    %c0_i32 = arith.constant 0 : i32
    %22 = vector.broadcast %c0_i32 : i32 to vector<4x4xi32>
    %23 = arith.cmpi eq, %2, %22 : vector<4x4xi32>
    %24 = vector.shape_cast %21 : vector<4x1xf32> to vector<4x1xf32>
    %25 = vector.broadcast %24 : vector<4x1xf32> to vector<4x4xf32>
    %26 = arith.select %23, %25, %15 : vector<4x4xi1>, vector<4x4xf32>
    %27 = vector.extract_strided_slice %0 {offsets = [0, 0], sizes = [1, 4], strides = [1, 1]} : vector<4x4xf32> to vector<1x4xf32>
    %28 = vector.broadcast %18 : vector<1x1xf32> to vector<1x4xf32>
    %29 = arith.mulf %27, %28 : vector<1x4xf32>
    %30 = vector.broadcast %21 : vector<4x1xf32> to vector<4x4xf32>
    %31 = vector.broadcast %29 : vector<1x4xf32> to vector<4x4xf32>
    %32 = arith.mulf %30, %31 : vector<4x4xf32>
    %33 = arith.subf %0, %32 : vector<4x4xf32>
    %34 = vector.extract_strided_slice %33 {offsets = [1, 1], sizes = [1, 1], strides = [1, 1]} : vector<4x4xf32> to vector<1x1xf32>
    %35 = arith.maximumf %34, %14 : vector<1x1xf32>
    %36 = math.rsqrt %35 : vector<1x1xf32>
    %37 = vector.extract_strided_slice %33 {offsets = [0, 1], sizes = [4, 1], strides = [1, 1]} : vector<4x4xf32> to vector<4x1xf32>
    %38 = vector.broadcast %36 : vector<1x1xf32> to vector<4x1xf32>
    %39 = arith.mulf %37, %38 : vector<4x1xf32>
    %c1_i32 = arith.constant 1 : i32
    %40 = vector.broadcast %c1_i32 : i32 to vector<4x4xi32>
    %41 = arith.cmpi eq, %2, %40 : vector<4x4xi32>
    %42 = vector.shape_cast %39 : vector<4x1xf32> to vector<4x1xf32>
    %43 = vector.broadcast %42 : vector<4x1xf32> to vector<4x4xf32>
    %44 = arith.select %41, %43, %26 : vector<4x4xi1>, vector<4x4xf32>
    %45 = vector.extract_strided_slice %33 {offsets = [1, 0], sizes = [1, 4], strides = [1, 1]} : vector<4x4xf32> to vector<1x4xf32>
    %46 = vector.broadcast %36 : vector<1x1xf32> to vector<1x4xf32>
    %47 = arith.mulf %45, %46 : vector<1x4xf32>
    %48 = vector.broadcast %39 : vector<4x1xf32> to vector<4x4xf32>
    %49 = vector.broadcast %47 : vector<1x4xf32> to vector<4x4xf32>
    %50 = arith.mulf %48, %49 : vector<4x4xf32>
    %51 = arith.subf %33, %50 : vector<4x4xf32>
    %52 = vector.extract_strided_slice %51 {offsets = [2, 2], sizes = [1, 1], strides = [1, 1]} : vector<4x4xf32> to vector<1x1xf32>
    %53 = arith.maximumf %52, %14 : vector<1x1xf32>
    %54 = math.rsqrt %53 : vector<1x1xf32>
    %55 = vector.extract_strided_slice %51 {offsets = [0, 2], sizes = [4, 1], strides = [1, 1]} : vector<4x4xf32> to vector<4x1xf32>
    %56 = vector.broadcast %54 : vector<1x1xf32> to vector<4x1xf32>
    %57 = arith.mulf %55, %56 : vector<4x1xf32>
    %c2_i32 = arith.constant 2 : i32
    %58 = vector.broadcast %c2_i32 : i32 to vector<4x4xi32>
    %59 = arith.cmpi eq, %2, %58 : vector<4x4xi32>
    %60 = vector.shape_cast %57 : vector<4x1xf32> to vector<4x1xf32>
    %61 = vector.broadcast %60 : vector<4x1xf32> to vector<4x4xf32>
    %62 = arith.select %59, %61, %44 : vector<4x4xi1>, vector<4x4xf32>
    %63 = vector.extract_strided_slice %51 {offsets = [2, 0], sizes = [1, 4], strides = [1, 1]} : vector<4x4xf32> to vector<1x4xf32>
    %64 = vector.broadcast %54 : vector<1x1xf32> to vector<1x4xf32>
    %65 = arith.mulf %63, %64 : vector<1x4xf32>
    %66 = vector.broadcast %57 : vector<4x1xf32> to vector<4x4xf32>
    %67 = vector.broadcast %65 : vector<1x4xf32> to vector<4x4xf32>
    %68 = arith.mulf %66, %67 : vector<4x4xf32>
    %69 = arith.subf %51, %68 : vector<4x4xf32>
    %70 = vector.extract_strided_slice %69 {offsets = [3, 3], sizes = [1, 1], strides = [1, 1]} : vector<4x4xf32> to vector<1x1xf32>
    %71 = arith.maximumf %70, %14 : vector<1x1xf32>
    %72 = math.rsqrt %71 : vector<1x1xf32>
    %73 = vector.extract_strided_slice %69 {offsets = [0, 3], sizes = [4, 1], strides = [1, 1]} : vector<4x4xf32> to vector<4x1xf32>
    %74 = vector.broadcast %72 : vector<1x1xf32> to vector<4x1xf32>
    %75 = arith.mulf %73, %74 : vector<4x1xf32>
    %c3_i32 = arith.constant 3 : i32
    %76 = vector.broadcast %c3_i32 : i32 to vector<4x4xi32>
    %77 = arith.cmpi eq, %2, %76 : vector<4x4xi32>
    %78 = vector.shape_cast %75 : vector<4x1xf32> to vector<4x1xf32>
    %79 = vector.broadcast %78 : vector<4x1xf32> to vector<4x4xf32>
    %80 = arith.select %77, %79, %62 : vector<4x4xi1>, vector<4x4xf32>
    %cst_5 = arith.constant 0.000000e+00 : f32
    %81 = vector.broadcast %cst_5 : f32 to vector<4x4xf32>
    %82 = arith.select %3, %80, %81 : vector<4x4xi1>, vector<4x4xf32>
    %c0_6 = arith.constant 0 : index
    %c0_7 = arith.constant 0 : index
    %83 = vector.load %arg1[%c0_6, %c0_7] : memref<4x4xf32, #tpu.memory_space<vmem>>, vector<4x4xf32>
    tpu.vector_store %arg1[%c0_6, %c0_7], %82 {strides = array<i32>} : memref<4x4xf32, #tpu.memory_space<vmem>>, vector<4x4xf32>,
    return
  }
}

</mosaic_0001>

<bundles_post_ra>
// kernel: tpu_custom_call.1
= control target key start
LH: loop header
LB: loop body
LE: loop exit
PB: predicated region body
PF: predicated region fallthrough
CT: control target
= control target key end

     0   :  { %6 = vsyncpa [#allocation3], 0  ;;  %s279_s0 = inlined_call_operand.hbm [shape: f32[4,4], index: 0, kind: input, shape index: {}]   ;;  %s280_s1 = inlined_call_operand.hbm [shape: f32[4,4], index: 1, kind: output, shape index: {}]  }
   0x1   :  { %7 = vsyncpa [#allocation4], 0  ;;  %s221_s6 = smov [#allocation2]   ;;  %s173_s10 = scalar_lea.hbm %s279_s0, 64 }
   0x2   :  { %s14_s7 = sshll.u32 %s221_s6, 4  ;;  %p174_p0 = scmp.ne.s32.totalorder %s279_s0, %s173_s10  ;;  %s15_s7 = int_to_ptr.vmem [resolvable:$true] %s14_s7 }
   0x3   :  { %p177_p1 = scmp.lt.u32.totalorder %s173_s10, %s279_s0 }
   0x5   :  { %p179_p2 = pnand %p177_p1, %p174_p0 }
   0x7   :  { %182 = shalt.err (!%p179_p2)
}
   0x8   :  { %s183_s15 = scalar_lea.vmem %s15_s7, 64  ;;  %p188_p4 = scmp.lt.s32.totalorder %s15_s7, %s15_s7 }
   0x9   :  { %p184_p3 = scmp.ne.s32.totalorder %s15_s7, %s183_s15  ;;  %p189_p5 = scmp.lt.s32.totalorder %s183_s15, %s183_s15 }
   0xb   :  { %p190_p6 = por %p189_p5, %p188_p4 }
   0xd   :  { %p191_p7 = pnand %p190_p6, %p184_p3 }
   0xf   :  { %194 = shalt.err (!%p191_p7)
}
  0x10   :  { %17 = dma.hbm_to_vmem [thread:$0]  %s279_s0, 64, %s15_s7, [#allocation3]  }
  0x11   :  { %217 = dma.done.wait [#allocation3], 64  }
  0x12   :  { %218 = vsyncadd [#allocation3], 4294967232  ;;  %v22_v0 = vlaneseq  ;;  %vm29_vm1 = vcmask 27648   ;;  %v21_v3 = vld [vmem:[#allocation2] sm:$0xf]  ;;  %v222_v6 = vmov 0  }
  0x13   :  { %159 = vset.pattern.permute.xlu0 %v222_v6  ;;  %160 = vset.pattern.permute.xlu1 %v222_v6  ;;  %v223_v21 = vmov 1   ;;  %v224_v33 = vmov 2   ;;  %v225_v45 = vmov 3   ;;  %s226_s18 = smov [#allocation5]  }
  0x14   :  { %v249_v1 = vshrl.u32 %v22_v0, 7  ;;  %v251_v2 = vand.u32 127, %v22_v0  ;;  %s142_s19 = sshll.u32 %s226_s18, 4  ;;  %s143_s19 = int_to_ptr.vmem [resolvable:$true] %s142_s19 }
  0x15   :  { %s195_s20 = scalar_lea.vmem %s143_s19, 64  ;;  %p200_p9 = scmp.lt.s32.totalorder %s143_s19, %s143_s19 }
  0x16   :  { %vm27_vm0 = vcmp.eq.s32.totalorder %v249_v1, %v251_v2  ;;  %v46_v17 = vsub.s32 0, %v249_v1  ;;  %v72_v29 = vsub.s32 1, %v249_v1  ;;  %v98_v41 = vsub.s32 2, %v249_v1  ;;  %p196_p8 = scmp.ne.s32.totalorder %s143_s19, %s195_s20  ;;  %p201_p10 = scmp.lt.s32.totalorder %s195_s20, %s195_s20 }
  0x17   :  { %v28_v4 = vsel %vm27_vm0, %v21_v3, 0.0  ;;  %v124_v53 = vsub.s32 3, %v249_v1  ;;  %vm49_vm2 = vcmp.eq.s32.totalorder %v251_v2, 0  ;;  %vm75_vm3 = vcmp.eq.s32.totalorder %v251_v2, 1 }
  0x18   :  { %v30_v5 = vsel %vm29_vm1, %v28_v4, 0.0  ;;  %vm101_vm4 = vcmp.eq.s32.totalorder %v251_v2, 2  ;;  %vm127_vm5 = vcmp.eq.s32.totalorder %v251_v2, 3  ;;  %vm26_vm6 = vcmp.ge.s32.totalorder %v249_v1, %v251_v2  ;;  %p202_p11 = por %p201_p10, %p200_p9 }
  0x19   :  { %31 = vadd.xlane.f32.xlu0 %v30_v5 }
  0x1a   :  { %p203_p12 = pnand %p202_p11, %p196_p8 }
  0xa6   :  { %v32_v7 = vpop.xlane.xlu0 %31 }
  0xa7   :  { %v33_v8 = vrot.slane %v32_v7, 4 }
  0xa9   :  { %v34_v9 = vadd.f32 %v33_v8, %v32_v7 }
  0xab   :  { %v35_v10 = vrot.slane %v34_v9, 2 }
  0xad   :  { %v36_v11 = vadd.f32 %v35_v10, %v34_v9 }
  0xaf   :  { %v37_v12 = vrot.slane %v36_v11, 1 }
  0xb1   :  { %v38_v13 = vadd.f32 %v37_v12, %v36_v11 }
  0xb3   :  { %151 = vpush %v38_v13 }
  0xe4   :  { %s152_s0 = spop %151 }
  0xe5   :  { %v40_v14 = vstv %s152_s0 }
  0xe6   :  { %v41_v15 = vmul.f32 2.5e-13, %v40_v14 }
  0xe8   :  { %v42_v16 = vmax.f32 %v21_v3, %v41_v15 }
  0xea   :  { %165 = vrsqrt.f32 %v42_v16 }
  0xf4   :  { %v166_v18 = vpop.eup %165 }
  0xf5   :  { %58 = vperm.xlu0 %159, %v166_v18   ;;  %v47_v19 = vrot.slane %v166_v18, %v46_v17 }
  0xf7   :  { %v48_v20 = vmul.f32 %v47_v19, %v21_v3 }
  0xf9   :  { %52 = vperm.xlu1 %160, %v48_v20   ;;  %164 = vset.pattern.permute.xlu0 %v225_v45 }
  0xfd   :  { %161 = vset.pattern.permute.xlu1 %v223_v21 }
 0x174   :  { %v59_v22 = vpop.permute.xlu0 %58 }
 0x175   :  { %v61_v23 = vmul.f32 %v59_v22, %v21_v3 }
 0x177   :  { %v65_v24 = vrot.slane %v61_v23, %v46_v17 }
 0x178   :  { %v53_v25 = vpop.permute.xlu1 %52 }
 0x179   :  { %v66_v26 = vmul.f32 %v65_v24, %v53_v25  ;;  %v55_v57 = vsel %vm49_vm2, %v53_v25, 0.0 }
 0x17b   :  { %v67_v27 = vsub.f32 %v21_v3, %v66_v26 }
 0x17d   :  { %v68_v28 = vmax.f32 %v67_v27, %v41_v15 }
 0x17f   :  { %167 = vrsqrt.f32 %v68_v28 }
 0x189   :  { %v168_v30 = vpop.eup %167 }
 0x18a   :  { %84 = vperm.xlu1 %161, %v168_v30   ;;  %v73_v31 = vrot.slane %v168_v30, %v72_v29 }
 0x18c   :  { %v74_v32 = vmul.f32 %v73_v31, %v67_v27 }
 0x18e   :  { %78 = vperm.xlu1 %161, %v74_v32  }
 0x192   :  { %162 = vset.pattern.permute.xlu1 %v224_v33 }
 0x209   :  { %v85_v34 = vpop.permute.xlu1 %84 }
 0x20a   :  { %v87_v35 = vmul.f32 %v85_v34, %v67_v27 }
 0x20c   :  { %v91_v36 = vrot.slane %v87_v35, %v72_v29 }
 0x20d   :  { %v79_v37 = vpop.permute.xlu1 %78 }
 0x20e   :  { %v92_v38 = vmul.f32 %v91_v36, %v79_v37  ;;  %v81_v58 = vsel %vm75_vm3, %v79_v37, %v55_v57 }
 0x210   :  { %v93_v39 = vsub.f32 %v67_v27, %v92_v38 }
 0x212   :  { %v94_v40 = vmax.f32 %v93_v39, %v41_v15 }
 0x214   :  { %169 = vrsqrt.f32 %v94_v40 }
 0x21e   :  { %v170_v42 = vpop.eup %169 }
 0x21f   :  { %110 = vperm.xlu1 %162, %v170_v42   ;;  %v99_v43 = vrot.slane %v170_v42, %v98_v41 }
 0x221   :  { %v100_v44 = vmul.f32 %v99_v43, %v93_v39 }
 0x223   :  { %104 = vperm.xlu1 %162, %v100_v44  }
 0x227   :  { %163 = vset.pattern.permute.xlu1 %v225_v45 }
 0x29e   :  { %v111_v46 = vpop.permute.xlu1 %110 }
 0x29f   :  { %v113_v47 = vmul.f32 %v111_v46, %v93_v39 }
 0x2a1   :  { %v117_v48 = vrot.slane %v113_v47, %v98_v41 }
 0x2a2   :  { %v105_v49 = vpop.permute.xlu1 %104 }
 0x2a3   :  { %v118_v50 = vmul.f32 %v117_v48, %v105_v49  ;;  %v107_v59 = vsel %vm101_vm4, %v105_v49, %v81_v58 }
 0x2a5   :  { %v119_v51 = vsub.f32 %v93_v39, %v118_v50 }
 0x2a7   :  { %v120_v52 = vmax.f32 %v119_v51, %v41_v15 }
 0x2a9   :  { %171 = vrsqrt.f32 %v120_v52 }
 0x2b3   :  { %v172_v54 = vpop.eup %171 }
 0x2b4   :  { %v125_v55 = vrot.slane %v172_v54, %v124_v53 }
 0x2b6   :  { %v126_v56 = vmul.f32 %v125_v55, %v119_v51 }
 0x2b8   :  { %130 = vperm.xlu1 %163, %v126_v56  }
 0x337   :  { %v131_v60 = vpop.permute.xlu1 %130 }
 0x338   :  { %v133_v61 = vsel %vm127_vm5, %v131_v60, %v107_v59 }
 0x339   :  { %v134_v62 = vsel %vm26_vm6, %v133_v61, 0.0 }
 0x33a   :  { %135 = vst.msk [vmem:[#allocation5] sm:$0xf] %vm29_vm1, %v134_v62 }
 0x33b   :  { %206 = shalt.err (!%p203_p12)
}
 0x33c   :  { %s207_s23 = scalar_lea.hbm %s280_s1, 64 }
 0x33d   :  { %p208_p13 = scmp.ne.s32.totalorder %s280_s1, %s207_s23  ;;  %p211_p0 = scmp.lt.u32.totalorder %s207_s23, %s280_s1 }
 0x33f   :  { %p213_p1 = pnand %p211_p0, %p208_p13 }
 0x341   :  { %216 = shalt.err (!%p213_p1)
}
 0x342   :  { %145 = dma.vmem_to_hbm [thread:$0]  %s143_s19, 64, %s280_s1, [#allocation4]  }
 0x343   :  { %219 = dma.done.wait [#allocation4], 64  }
 0x344   :  { %220 = vsyncadd [#allocation4], 4294967232 }
 0x345   :  { %149 = vsyncpa [#allocation3], 1 }
 0x346   :  { %150 = vsyncpa [#allocation4], 1 }

</bundles_post_ra>
